<compile_context>
chip_gen: v7x
topology: tpu7x:2x2x1
jax: 0.10.0
libtpu: 0.0.40
codegen_flags: <defaults>
</compile_context>

<pallas_src>
import jax
import jax.numpy as jnp
from jax.experimental import pallas as pl
from jax.experimental.pallas import tpu as pltpu


def _tag_mean_encoder_kernel(tags_ref, mask_ref, table_ref, w_ref,
                             gamma_ref, beta_ref, out_ref):
    # tags_ref : (TB, L) int32   tag ids
    # mask_ref : (TB, L) f32     mask (nonzero == valid)
    # table_ref: (V, E)          embedding table (f32 or bf16)
    # w_ref    : (E, D)          fc weight, pre-transposed (f32 or bf16)
    # gamma_ref: (1, D)  f32     layer-norm scale
    # beta_ref : (1, D)  f32     layer-norm shift
    # out_ref  : (TB, D) f32
    TB, L = tags_ref.shape
    V = table_ref.shape[0]
    cdt = table_ref.dtype

    tags = tags_ref[...]
    msk = mask_ref[...]

    # One-hot count over the vocab; UNMASKED sum over L (matches q.sum(1)).
    vocab_ids = jax.lax.broadcasted_iota(jnp.int32, (TB, V), 1)
    cnt = jnp.zeros((TB, V), jnp.float32)
    for l in range(L):                                # L is small & static
        cnt = cnt + (tags[:, l:l + 1] == vocab_ids).astype(jnp.float32)

    # Masked-mean denominator: 1 / #nonzero mask entries (per row).
    n_valid = jnp.sum((msk != 0.0).astype(jnp.float32), axis=-1, keepdims=True)
    # NOTE: torch would emit inf/nan on an all-zero mask row; we guard instead.
    inv_n = 1.0 / jnp.maximum(n_valid, 1.0)
    cnt = cnt * inv_n                                 # fold mean scale early

    # (TB,V)@(V,E) then (TB,E)@(E,D) on the MXU with f32 accumulation.
    emb_mean = jnp.dot(cnt.astype(cdt), table_ref[...],
                       preferred_element_type=jnp.float32)      # (TB, E)
    q = jnp.dot(emb_mean.astype(cdt), w_ref[...],
                preferred_element_type=jnp.float32)             # (TB, D)

    # Dropout is identity at inference.
    # TODO(synk): training-mode dropout would use pltpu.prng_seed / prng_random_bits.

    # LayerNorm over D (eps=1e-6, biased variance), single-pass statistics.
    d_inv = 1.0 / q.shape[-1]
    mean = jnp.sum(q, axis=-1, keepdims=True) * d_inv
    meansq = jnp.sum(q * q, axis=-1, keepdims=True) * d_inv
    var = jnp.maximum(meansq - mean * mean, 0.0)
    inv_std = jax.lax.rsqrt(var + 1e-6)
    out_ref[...] = ((q - mean) * inv_std) * gamma_ref[...] + beta_ref[...]


def tag_mean_encoder(tags, mask, embedding_matrix, fc_weight, ln_gamma,
                     ln_beta, *, tb=2048, compute_dtype=jnp.float32):
    """Pallas implementation of TagMeanEncoder.forward. Returns (q, None)."""
    B, L = tags.shape
    V, E = embedding_matrix.shape
    D = fc_weight.shape[0]            # fc_weight is (D, E) like nn.Linear.weight

    # TODO(synk): for very large vocabularies the one-hot path would be
    # replaced by an in-kernel DMA gather; the (TB, V) intermediate assumes a
    # small tag vocab (as in this module).

    tags_i32 = tags.astype(jnp.int32)
    mask2 = mask.reshape(B, L).astype(jnp.float32)
    table = embedding_matrix.astype(compute_dtype)
    w = fc_weight.T.astype(compute_dtype)             # (E, D)
    gamma = ln_gamma.reshape(1, D).astype(jnp.float32)
    beta = ln_beta.reshape(1, D).astype(jnp.float32)

    # ---- batch tile selection ---------------------------------------------
    def _rup(x, m):
        return ((x + m - 1) // m) * m

    tb_eff = max(8, min(tb, _rup(B, 8)))              # sublane multiple
    # Keep >= 2 grid steps on big batches so the "parallel" axis can shard
    # across both TensorCores (v7x megacore) without shrinking tiles too far.
    if B >= 2048:
        tb_eff = min(tb_eff, _rup(pl.cdiv(B, 2), 8))
    grid = (pl.cdiv(B, tb_eff),)                      # ragged last block OK

    q = pl.pallas_call(
        _tag_mean_encoder_kernel,
        out_shape=jax.ShapeDtypeStruct((B, D), jnp.float32),
        grid_spec=pltpu.PrefetchScalarGridSpec(
            num_scalar_prefetch=0,
            grid=grid,
            in_specs=[
                pl.BlockSpec((tb_eff, L), lambda b: (b, 0)),   # tags
                pl.BlockSpec((tb_eff, L), lambda b: (b, 0)),   # mask
                pl.BlockSpec((V, E), lambda b: (0, 0)),        # embedding table
                pl.BlockSpec((E, D), lambda b: (0, 0)),        # fc weight (E,D)
                pl.BlockSpec((1, D), lambda b: (0, 0)),        # gamma
                pl.BlockSpec((1, D), lambda b: (0, 0)),        # beta
            ],
            out_specs=pl.BlockSpec((tb_eff, D), lambda b: (b, 0)),
        ),
        compiler_params=pltpu.CompilerParams(
            dimension_semantics=("parallel",)),
    )(tags_i32, mask2, table, w, gamma, beta)

    return q, None


def _reference(tags, mask, embedding_matrix, fc_weight, ln_gamma, ln_beta):
    emb = embedding_matrix[tags]                               # (B, L, E)
    q = jnp.einsum("ble,de->bld", emb, fc_weight)              # (B, L, D)
    B = tags.shape[0]
    count = jnp.sum((mask != 0).astype(jnp.float32), axis=-1).reshape(B, 1)
    q = jnp.sum(q, axis=1) * (1.0 / count)                     # (B, D)
    mean = jnp.mean(q, axis=-1, keepdims=True)
    var = jnp.mean((q - mean) ** 2, axis=-1, keepdims=True)
    return (q - mean) / jnp.sqrt(var + 1e-6) * ln_gamma + ln_beta


if __name__ == "__main__":
    # Small, module-consistent shapes.
    B, L = 2, 8                      # batch, number of tags per example
    VOCAB = 50                       # vocab_size
    E = 32                           # word_embedding_dim
    D = 128                          # d_model (LayerNorm dim)

    key = jax.random.PRNGKey(0)
    k_emb, k_fc, k_tags, k_mask = jax.random.split(key, 4)

    # Deterministic synthetic parameters (module __init__ shapes; .npy table
    # replaced with in-script random init).
    embedding_matrix = jax.random.normal(k_emb, (VOCAB, E), jnp.float32) * 0.1
    fc_weight = jax.random.normal(k_fc, (D, E), jnp.float32) * 0.1  # Linear(E->D, bias=False)
    ln_gamma = jnp.ones((D,), jnp.float32)
    ln_beta = jnp.zeros((D,), jnp.float32)

    # Inputs.
    tags = jax.random.randint(k_tags, (B, L), 0, VOCAB, dtype=jnp.int32)
    mask = (jax.random.uniform(k_mask, (B, 1, L)) > 0.3).astype(jnp.float32)
    mask = mask.at[:, :, 0].set(1.0)   # guarantee at least one non-zero per row

    q_ref = _reference(tags, mask, embedding_matrix, fc_weight, ln_gamma,
                       ln_beta)

    # f32 operands: exact agreement with the reference.
    q, attn = tag_mean_encoder(tags, mask, embedding_matrix, fc_weight,
                               ln_gamma, ln_beta)
    q = jax.block_until_ready(q)
    assert q.shape == (B, D)
    assert attn is None
    assert jnp.allclose(q, q_ref, atol=1e-4, rtol=1e-4), "f32 mismatch vs reference"

    # bf16 matmul operands (halved DMA / MXU-native), f32 accumulate + f32 LN.
    q_bf, _ = tag_mean_encoder(tags, mask, embedding_matrix, fc_weight,
                               ln_gamma, ln_beta, compute_dtype=jnp.bfloat16)
    q_bf = jax.block_until_ready(q_bf)
    assert jnp.allclose(q_bf, q_ref, atol=5e-2, rtol=5e-2), "bf16 mismatch vs reference"

    print("KERNEL_OK")
</pallas_src>

<mosaic_0001>
module attributes {stable_mosaic.version = 11 : i64} {
  func.func @_tag_mean_encoder_kernel(%arg0: i32, %arg1: memref<8x8xi32, #tpu.memory_space<vmem>>, %arg2: memref<8x8xf32, #tpu.memory_space<vmem>>, %arg3: memref<50x32xf32, #tpu.memory_space<vmem>>, %arg4: memref<32x128xf32, #tpu.memory_space<vmem>>, %arg5: memref<1x128xf32, #tpu.memory_space<vmem>>, %arg6: memref<1x128xf32, #tpu.memory_space<vmem>>, %arg7: memref<8x128xf32, #tpu.memory_space<vmem>>) attributes {dimension_semantics = [#tpu.dimension_semantics<parallel>], iteration_bounds = array<i64: 1>, scalar_prefetch = 0 : i64, scratch_operands = 0 : i64, tpu.core_type = #tpu.core_type<tc>, window_params = [{transform_indices = @transform_0, window_bounds = array<i64: 8, 8>}, {transform_indices = @transform_1, window_bounds = array<i64: 8, 8>}, {pipeline_mode = #tpu.pipeline_mode<synchronous>, transform_indices = @transform_2, window_bounds = array<i64: 50, 32>}, {pipeline_mode = #tpu.pipeline_mode<synchronous>, transform_indices = @transform_3, window_bounds = array<i64: 32, 128>}, {pipeline_mode = #tpu.pipeline_mode<synchronous>, transform_indices = @transform_4, window_bounds = array<i64: 1, 128>}, {pipeline_mode = #tpu.pipeline_mode<synchronous>, transform_indices = @transform_5, window_bounds = array<i64: 1, 128>}, {transform_indices = @transform_6, window_bounds = array<i64: 8, 128>}]} {
    %c0 = arith.constant 0 : index
    %c0_0 = arith.constant 0 : index
    %0 = vector.load %arg1[%c0, %c0_0] : memref<8x8xi32, #tpu.memory_space<vmem>>, vector<8x8xi32>
    %c0_1 = arith.constant 0 : index
    %c0_2 = arith.constant 0 : index
    %1 = vector.load %arg2[%c0_1, %c0_2] : memref<8x8xf32, #tpu.memory_space<vmem>>, vector<8x8xf32>
    %2 = tpu.iota {dimensions = array<i32: 1>} : vector<8x50xi32>
    %cst = arith.constant 0.000000e+00 : f32
    %3 = vector.broadcast %cst : f32 to vector<8x50xf32>
    %4 = vector.extract_strided_slice %0 {offsets = [0, 0], sizes = [8, 1], strides = [1, 1]} : vector<8x8xi32> to vector<8x1xi32>
    %5 = vector.broadcast %4 : vector<8x1xi32> to vector<8x50xi32>
    %6 = arith.cmpi eq, %5, %2 : vector<8x50xi32>
    %7 = arith.extui %6 : vector<8x50xi1> to vector<8x50xi32>
    %8 = arith.sitofp %7 : vector<8x50xi32> to vector<8x50xf32>
    %9 = arith.addf %3, %8 : vector<8x50xf32>
    %10 = vector.extract_strided_slice %0 {offsets = [0, 1], sizes = [8, 1], strides = [1, 1]} : vector<8x8xi32> to vector<8x1xi32>
    %11 = vector.broadcast %10 : vector<8x1xi32> to vector<8x50xi32>
    %12 = arith.cmpi eq, %11, %2 : vector<8x50xi32>
    %13 = arith.extui %12 : vector<8x50xi1> to vector<8x50xi32>
    %14 = arith.sitofp %13 : vector<8x50xi32> to vector<8x50xf32>
    %15 = arith.addf %9, %14 : vector<8x50xf32>
    %16 = vector.extract_strided_slice %0 {offsets = [0, 2], sizes = [8, 1], strides = [1, 1]} : vector<8x8xi32> to vector<8x1xi32>
    %17 = vector.broadcast %16 : vector<8x1xi32> to vector<8x50xi32>
    %18 = arith.cmpi eq, %17, %2 : vector<8x50xi32>
    %19 = arith.extui %18 : vector<8x50xi1> to vector<8x50xi32>
    %20 = arith.sitofp %19 : vector<8x50xi32> to vector<8x50xf32>
    %21 = arith.addf %15, %20 : vector<8x50xf32>
    %22 = vector.extract_strided_slice %0 {offsets = [0, 3], sizes = [8, 1], strides = [1, 1]} : vector<8x8xi32> to vector<8x1xi32>
    %23 = vector.broadcast %22 : vector<8x1xi32> to vector<8x50xi32>
    %24 = arith.cmpi eq, %23, %2 : vector<8x50xi32>
    %25 = arith.extui %24 : vector<8x50xi1> to vector<8x50xi32>
    %26 = arith.sitofp %25 : vector<8x50xi32> to vector<8x50xf32>
    %27 = arith.addf %21, %26 : vector<8x50xf32>
    %28 = vector.extract_strided_slice %0 {offsets = [0, 4], sizes = [8, 1], strides = [1, 1]} : vector<8x8xi32> to vector<8x1xi32>
    %29 = vector.broadcast %28 : vector<8x1xi32> to vector<8x50xi32>
    %30 = arith.cmpi eq, %29, %2 : vector<8x50xi32>
    %31 = arith.extui %30 : vector<8x50xi1> to vector<8x50xi32>
    %32 = arith.sitofp %31 : vector<8x50xi32> to vector<8x50xf32>
    %33 = arith.addf %27, %32 : vector<8x50xf32>
    %34 = vector.extract_strided_slice %0 {offsets = [0, 5], sizes = [8, 1], strides = [1, 1]} : vector<8x8xi32> to vector<8x1xi32>
    %35 = vector.broadcast %34 : vector<8x1xi32> to vector<8x50xi32>
    %36 = arith.cmpi eq, %35, %2 : vector<8x50xi32>
    %37 = arith.extui %36 : vector<8x50xi1> to vector<8x50xi32>
    %38 = arith.sitofp %37 : vector<8x50xi32> to vector<8x50xf32>
    %39 = arith.addf %33, %38 : vector<8x50xf32>
    %40 = vector.extract_strided_slice %0 {offsets = [0, 6], sizes = [8, 1], strides = [1, 1]} : vector<8x8xi32> to vector<8x1xi32>
    %41 = vector.broadcast %40 : vector<8x1xi32> to vector<8x50xi32>
    %42 = arith.cmpi eq, %41, %2 : vector<8x50xi32>
    %43 = arith.extui %42 : vector<8x50xi1> to vector<8x50xi32>
    %44 = arith.sitofp %43 : vector<8x50xi32> to vector<8x50xf32>
    %45 = arith.addf %39, %44 : vector<8x50xf32>
    %46 = vector.extract_strided_slice %0 {offsets = [0, 7], sizes = [8, 1], strides = [1, 1]} : vector<8x8xi32> to vector<8x1xi32>
    %47 = vector.broadcast %46 : vector<8x1xi32> to vector<8x50xi32>
    %48 = arith.cmpi eq, %47, %2 : vector<8x50xi32>
    %49 = arith.extui %48 : vector<8x50xi1> to vector<8x50xi32>
    %50 = arith.sitofp %49 : vector<8x50xi32> to vector<8x50xf32>
    %51 = arith.addf %45, %50 : vector<8x50xf32>
    %cst_3 = arith.constant 0.000000e+00 : f32
    %52 = vector.broadcast %cst_3 : f32 to vector<8x8xf32>
    %53 = arith.cmpf one, %1, %52 : vector<8x8xf32>
    %54 = arith.extui %53 : vector<8x8xi1> to vector<8x8xi32>
    %55 = arith.sitofp %54 : vector<8x8xi32> to vector<8x8xf32>
    %cst_4 = arith.constant dense<0.000000e+00> : vector<8xf32>
    %56 = vector.multi_reduction <add>, %55, %cst_4 [1] : vector<8x8xf32> to vector<8xf32>
    %57 = vector.shape_cast %56 : vector<8xf32> to vector<8x1xf32>
    %cst_5 = arith.constant 1.000000e+00 : f32
    %58 = vector.broadcast %cst_5 : f32 to vector<8x1xf32>
    %59 = arith.maximumf %57, %58 : vector<8x1xf32>
    %cst_6 = arith.constant 1.000000e+00 : f32
    %60 = vector.broadcast %cst_6 : f32 to vector<8x1xf32>
    %61 = arith.divf %60, %59 : vector<8x1xf32>
    %62 = vector.broadcast %61 : vector<8x1xf32> to vector<8x50xf32>
    %63 = arith.mulf %51, %62 : vector<8x50xf32>
    %c0_7 = arith.constant 0 : index
    %c0_8 = arith.constant 0 : index
    %64 = vector.load %arg3[%c0_7, %c0_8] : memref<50x32xf32, #tpu.memory_space<vmem>>, vector<50x32xf32>
    %cst_9 = arith.constant dense<0.000000e+00> : vector<8x32xf32>
    %65 = tpu.matmul %63, %64, %cst_9 {dimension_numbers = #tpu.dot_dimension_numbers<[1], [0], [0], [1], [0, 0, 1, 1], [], []>} : vector<8x50xf32>, vector<50x32xf32>, vector<8x32xf32> -> vector<8x32xf32>
    %c0_10 = arith.constant 0 : index
    %c0_11 = arith.constant 0 : index
    %66 = vector.load %arg4[%c0_10, %c0_11] : memref<32x128xf32, #tpu.memory_space<vmem>>, vector<32x128xf32>
    %cst_12 = arith.constant dense<0.000000e+00> : vector<8x128xf32>
    %67 = tpu.matmul %65, %66, %cst_12 {dimension_numbers = #tpu.dot_dimension_numbers<[1], [0], [0], [1], [0, 0, 1, 1], [], []>} : vector<8x32xf32>, vector<32x128xf32>, vector<8x128xf32> -> vector<8x128xf32>
    %cst_13 = arith.constant dense<0.000000e+00> : vector<8xf32>
    %68 = vector.multi_reduction <add>, %67, %cst_13 [1] : vector<8x128xf32> to vector<8xf32>
    %69 = vector.shape_cast %68 : vector<8xf32> to vector<8x1xf32>
    %cst_14 = arith.constant 7.812500e-03 : f32
    %70 = vector.broadcast %cst_14 : f32 to vector<8x1xf32>
    %71 = arith.mulf %69, %70 : vector<8x1xf32>
    %72 = arith.mulf %67, %67 : vector<8x128xf32>
    %cst_15 = arith.constant dense<0.000000e+00> : vector<8xf32>
    %73 = vector.multi_reduction <add>, %72, %cst_15 [1] : vector<8x128xf32> to vector<8xf32>
    %74 = vector.shape_cast %73 : vector<8xf32> to vector<8x1xf32>
    %cst_16 = arith.constant 7.812500e-03 : f32
    %75 = vector.broadcast %cst_16 : f32 to vector<8x1xf32>
    %76 = arith.mulf %74, %75 : vector<8x1xf32>
    %77 = arith.mulf %71, %71 : vector<8x1xf32>
    %78 = arith.subf %76, %77 : vector<8x1xf32>
    %cst_17 = arith.constant 0.000000e+00 : f32
    %79 = vector.broadcast %cst_17 : f32 to vector<8x1xf32>
    %80 = arith.maximumf %78, %79 : vector<8x1xf32>
    %cst_18 = arith.constant 9.99999997E-7 : f32
    %81 = vector.broadcast %cst_18 : f32 to vector<8x1xf32>
    %82 = arith.addf %80, %81 : vector<8x1xf32>
    %83 = math.rsqrt %82 : vector<8x1xf32>
    %84 = vector.broadcast %71 : vector<8x1xf32> to vector<8x128xf32>
    %85 = arith.subf %67, %84 : vector<8x128xf32>
    %86 = vector.broadcast %83 : vector<8x1xf32> to vector<8x128xf32>
    %87 = arith.mulf %85, %86 : vector<8x128xf32>
    %c0_19 = arith.constant 0 : index
    %c0_20 = arith.constant 0 : index
    %88 = vector.load %arg5[%c0_19, %c0_20] : memref<1x128xf32, #tpu.memory_space<vmem>>, vector<1x128xf32>
    %89 = vector.broadcast %88 : vector<1x128xf32> to vector<8x128xf32>
    %90 = arith.mulf %87, %89 : vector<8x128xf32>
    %c0_21 = arith.constant 0 : index
    %c0_22 = arith.constant 0 : index
    %91 = vector.load %arg6[%c0_21, %c0_22] : memref<1x128xf32, #tpu.memory_space<vmem>>, vector<1x128xf32>
    %92 = vector.broadcast %91 : vector<1x128xf32> to vector<8x128xf32>
    %93 = arith.addf %90, %92 : vector<8x128xf32>
    %c0_23 = arith.constant 0 : index
    %c0_24 = arith.constant 0 : index
    %94 = vector.load %arg7[%c0_23, %c0_24] : memref<8x128xf32, #tpu.memory_space<vmem>>, vector<8x128xf32>
    tpu.vector_store %arg7[%c0_23, %c0_24], %93 {strides = array<i32>} : memref<8x128xf32, #tpu.memory_space<vmem>>, vector<8x128xf32>,
    return
  }
  func.func @transform_0(%arg0: i32) -> (i32, i32) {
    %c0_i32 = arith.constant 0 : i32
    %c0_i32_0 = arith.constant 0 : i32
    return %arg0, %c0_i32 : i32, i32
  }
  func.func @transform_1(%arg0: i32) -> (i32, i32) {
    %c0_i32 = arith.constant 0 : i32
    %c0_i32_0 = arith.constant 0 : i32
    return %arg0, %c0_i32 : i32, i32
  }
  func.func @transform_2(%arg0: i32) -> (i32, i32) {
    %c0_i32 = arith.constant 0 : i32
    %c0_i32_0 = arith.constant 0 : i32
    %c0_i32_1 = arith.constant 0 : i32
    return %c0_i32, %c0_i32_0 : i32, i32
  }
  func.func @transform_3(%arg0: i32) -> (i32, i32) {
    %c0_i32 = arith.constant 0 : i32
    %c0_i32_0 = arith.constant 0 : i32
    %c0_i32_1 = arith.constant 0 : i32
    return %c0_i32, %c0_i32_0 : i32, i32
  }
  func.func @transform_4(%arg0: i32) -> (i32, i32) {
    %c0_i32 = arith.constant 0 : i32
    %c0_i32_0 = arith.constant 0 : i32
    %c0_i32_1 = arith.constant 0 : i32
    return %c0_i32, %c0_i32_0 : i32, i32
  }
  func.func @transform_5(%arg0: i32) -> (i32, i32) {
    %c0_i32 = arith.constant 0 : i32
    %c0_i32_0 = arith.constant 0 : i32
    %c0_i32_1 = arith.constant 0 : i32
    return %c0_i32, %c0_i32_0 : i32, i32
  }
  func.func @transform_6(%arg0: i32) -> (i32, i32) {
    %c0_i32 = arith.constant 0 : i32
    %c0_i32_0 = arith.constant 0 : i32
    return %arg0, %c0_i32 : i32, i32
  }
}

</mosaic_0001>

<bundles_post_ra>
// kernel: tpu_custom_call.1
= control target key start
LH: loop header
LB: loop body
LE: loop exit
PB: predicated region body
PF: predicated region fallthrough
CT: control target
= control target key end

     0   :  { %vm87_vm0 = vcmask 64512   ;;  %v426_v2 = vmov 1   ;;  %s544_s0 = inlined_call_operand.vmem [shape: s32[2,8], index: 0, kind: input, shape index: {}]   ;;  %s545_s1 = inlined_call_operand.vmem [shape: f32[2,8], index: 1, kind: input, shape index: {}]   ;;  %s546_s2 = inlined_call_operand.vmem [shape: f32[50,32], index: 2, kind: input, shape index: {}]   ;;  %s547_s3 = inlined_call_operand.vmem [shape: f32[32,128], index: 3, kind: input, shape index: {}]   ;;  %s548_s4 = inlined_call_operand.vmem [shape: f32[1,128], index: 4, kind: input, shape index: {}]   ;;  %s549_s5 = inlined_call_operand.vmem [shape: f32[1,128], index: 5, kind: input, shape index: {}]   ;;  %s550_s6 = inlined_call_operand.hbm [shape: f32[2,128], index: 6, kind: output, shape index: {}]  }
   0x1   :  { %v25_v0 = vld [vmem:[%s545_s1] sm:$0xff]  ;;  %390 = vset.pattern.permute.xlu1 %v426_v2 }
   0x2   :  { %v24_v1 = vld [vmem:[%s544_s0] sm:$0xff]  ;;  %vm84_vm1 = vcmp.ne.f32.partialorder %v25_v0, 0.0 }
   0x3   :  { %11 = vsyncpa [#allocation3], 0  ;;  %v427_v3 = vmov 0.0   ;;  %36 = vperm.xlu1 %390, %v24_v1   ;;  %v428_v5 = vmov 0   ;;  %v429_v7 = vmov 2   ;;  %v430_v8 = vmov 3  }
   0x4   :  { %v313_v4 = vsel %vm84_vm1, 1.0, %v427_v3  ;;  %389 = vset.pattern.permute.xlu0 %v428_v5  ;;  %v431_v9 = vmov 4   ;;  %v432_v10 = vmov 5   ;;  %v433_v11 = vmov 6   ;;  %v95_v12 = vld [vmem:[%s546_s2] sm:$0xff]  ;;  %v96_v13 = vld [vmem:[%s546_s2 + $0x8] sm:$0xff] }
   0x5   :  { %v88_v6 = vsel %vm87_vm0, %v313_v4, 0.0  ;;  %v361_v14 = vpack.c.bf16 %v96_v13, %v95_v12  ;;  %v434_v15 = vmov 0.0|0.0   ;;  %v435_v16 = vmov 7   ;;  %v97_v17 = vld [vmem:[%s546_s2 + $0x10] sm:$0xff]  ;;  %v98_v18 = vld [vmem:[%s546_s2 + $0x18] sm:$0xff]  ;;  %v99_v20 = vld [vmem:[%s546_s2 + $0x20] sm:$0xff] }
   0x6   :  { %89 = vadd.xlane.f32.xlu0 %v88_v6  ;;  %360 = vmatprep.subr.bf16.mxu0 %v434_v15  ;;  %v364_v19 = vpack.c.bf16 %v98_v18, %v97_v17  ;;  %v100_v21 = vld [vmem:[%s546_s2 + $0x28] sm:$0xff]  ;;  %v101_v23 = vld [vmem:[%s546_s2 + $0x30] sm:$0x3]  ;;  %vm106_vm2 = vcmask 1041408   ;;  %vm436_vm3 = vmmov 0   ;;  %v180_v24 = vld [vmem:[%s547_s3] sm:$0xff]  ;;  %v26_v33 = vlaneseq }
   0x7   :  { %391 = vset.pattern.permute.xlu1 %v429_v7  ;;  %369 = vmatprep.subr.bf16.mxu1 %v434_v15  ;;  %v367_v22 = vpack.c.bf16 %v100_v21, %v99_v20  ;;  %v181_v25 = vld [vmem:[%s547_s3 + $0x8] sm:$0xff]  ;;  %v182_v26 = vld [vmem:[%s547_s3 + $0x10] sm:$0xff]  ;;  %v183_v28 = vld [vmem:[%s547_s3 + $0x18] sm:$0xff]  ;;  %vm102_vm12 = vcmask 408576   ;;  %vm184_vm13 = vcmask 261120  }
   0x8   :  { %43 = vperm.xlu1 %391, %v24_v1   ;;  %362 = vmatpush3.bf16.msra.mxu0 %v361_v14  ;;  %v370_v27 = vpack.c.bf16 %v181_v25, %v180_v24  ;;  %v373_v29 = vpack.c.bf16 %v183_v28, %v182_v26  ;;  %v27_v35 = vand.u32 127, %v26_v33  ;;  %v318_v12 = vld [vmem:[%s549_s5] ss:$0 sm:$0xff] }
   0x9   :  { %363 = vmatprep.subr.bf16.mxu0 %v434_v15  ;;  %346 = vmatprep.mubr.msk.f32.mxu0 %vm436_vm3, %v427_v3 }
   0xa   :  { %357 = vmatprep.mubr.msk.f32.mxu1 %vm436_vm3, %v427_v3  ;;  %371 = vmatpush3.bf16.msra.mxu1 %v370_v27 }
   0xb   :  { %372 = vmatprep.subr.bf16.mxu1 %v434_v15 }
   0xc   :  { %392 = vset.pattern.permute.xlu1 %v430_v8  ;;  %365 = vmatpush3.bf16.msra.mxu0 %v364_v19 }
   0xd   :  { %50 = vperm.xlu1 %392, %v24_v1   ;;  %366 = vmatprep.subr.bf16.mxu0 %v434_v15 }
   0xe   :  { %374 = vmatpush3.bf16.msra.mxu1 %v373_v29 }
  0x10   :  { %368 = vmatpush3.bf16.msra.mxu0 %v367_v22 }
  0x11   :  { %393 = vset.pattern.permute.xlu1 %v431_v9  ;;  %344 = vmatprep.subr.mxu0 %v427_v3 }
  0x12   :  { %57 = vperm.xlu1 %393, %v24_v1  }
  0x14   :  { %345 = vmatpush3.msk.msra.mxu0 %vm106_vm2, %v101_v23 }
  0x16   :  { %394 = vset.pattern.permute.xlu1 %v432_v10  ;;  %v317_v10 = vld [vmem:[%s548_s4] ss:$0 sm:$0xff] }
  0x17   :  { %64 = vperm.xlu1 %394, %v24_v1  }
  0x1b   :  { %395 = vset.pattern.permute.xlu1 %v433_v11 }
  0x1c   :  { %29 = vperm.xlu0 %389, %v24_v1   ;;  %71 = vperm.xlu1 %395, %v24_v1  }
  0x20   :  { %396 = vset.pattern.permute.xlu1 %v435_v16  ;;  %397 = vset.pattern.permute.xlu0 %v435_v16 }
  0x21   :  { %78 = vperm.xlu1 %396, %v24_v1  }
  0x82   :  { %v37_v30 = vpop.permute.xlu1 %36 }
  0x83   :  { %vm38_vm4 = vcmp.eq.s32.totalorder %v37_v30, %v27_v35 }
  0x84   :  { %v306_v40 = vsel %vm38_vm4, 1.0, %v427_v3 }
  0x87   :  { %v44_v31 = vpop.permute.xlu1 %43 }
  0x88   :  { %vm45_vm5 = vcmp.eq.s32.totalorder %v44_v31, %v27_v35 }
  0x89   :  { %v307_v44 = vsel %vm45_vm5, 1.0, %v427_v3 }
  0x8c   :  { %v51_v32 = vpop.permute.xlu1 %50 }
  0x8d   :  { %vm52_vm7 = vcmp.eq.s32.totalorder %v51_v32, %v27_v35 }
  0x8e   :  { %v308_v46 = vsel %vm52_vm7, 1.0, %v427_v3 }
  0x91   :  { %v58_v34 = vpop.permute.xlu1 %57 }
  0x92   :  { %vm59_vm8 = vcmp.eq.s32.totalorder %v58_v34, %v27_v35 }
  0x93   :  { %v90_v36 = vpop.xlane.xlu0 %89  ;;  %v309_v49 = vsel %vm59_vm8, 1.0, %v427_v3 }
  0x94   :  { %v91_v41 = vmax.f32 %v90_v36, 1.0 }
  0x96   :  { %v65_v37 = vpop.permute.xlu1 %64  ;;  %398 = vrcp.f32 %v91_v41 }
  0x97   :  { %vm66_vm9 = vcmp.eq.s32.totalorder %v65_v37, %v27_v35 }
  0x98   :  { %v310_v51 = vsel %vm66_vm9, 1.0, %v427_v3 }
  0x9b   :  { %v30_v38 = vpop.permute.xlu0 %29  ;;  %v72_v39 = vpop.permute.xlu1 %71 }
  0x9c   :  { %vm31_vm6 = vcmp.eq.s32.totalorder %v30_v38, %v27_v35  ;;  %vm73_vm10 = vcmp.eq.s32.totalorder %v72_v39, %v27_v35 }
  0x9d   :  { %v305_v42 = vsel %vm31_vm6, 1.0, %v427_v3  ;;  %v311_v53 = vsel %vm73_vm10, 1.0, %v427_v3 }
  0x9e   :  { %v41_v43 = vadd.f32 %v306_v40, %v305_v42 }
  0xa0   :  { %v48_v45 = vadd.f32 %v307_v44, %v41_v43  ;;  %v79_v47 = vpop.permute.xlu1 %78  ;;  %v399_v57 = vpop.eup %398 }
  0xa1   :  { %vm80_vm11 = vcmp.eq.s32.totalorder %v79_v47, %v27_v35 }
  0xa2   :  { %v55_v48 = vadd.f32 %v308_v46, %v48_v45  ;;  %v312_v54 = vsel %vm80_vm11, 1.0, %v427_v3 }
  0xa4   :  { %v62_v50 = vadd.f32 %v309_v49, %v55_v48 }
  0xa6   :  { %v69_v52 = vadd.f32 %v310_v51, %v62_v50 }
  0xa8   :  { %v76_v55 = vadd.f32 %v311_v53, %v69_v52 }
  0xaa   :  { %v83_v56 = vadd.f32 %v312_v54, %v76_v55 }
  0xac   :  { %v94_v58 = vmul.f32 %v399_v57, %v83_v56 }
  0xae   :  { %347 = vmatmul.mubr.msk.f32.vlgmr.msra.gmra.mrb[0].mxu0 %vm102_vm12, %v94_v58 }
 0x181   :  { %v176_v59 = vpop.f32.mrb[0].mxu0 }
 0x182   :  { %v348_v60 = vpop.f32.mrb[1].mxu0  ;;  %358 = vmatmul.mubr.msk.f32.vlgmr.msra.gmra.mrb[0].mxu1 %vm184_vm13, %v176_v59 }
 0x255   :  { %v254_v61 = vpop.f32.mrb[0].mxu1 }
 0x256   :  { %258 = vadd.xlane.f32.xlu1 %v254_v61  ;;  %v359_v62 = vpop.f32.mrb[1].mxu1  ;;  %v261_v63 = vmul.f32 %v254_v61, %v254_v61 }
 0x258   :  { %262 = vadd.xlane.f32.xlu0 %v261_v63 }
 0x2e3   :  { %v259_v0 = vpop.xlane.xlu1 %258 }
 0x2e4   :  { %v260_v1 = vmul.f32 0.0078125, %v259_v0 }
 0x2e5   :  { %v263_v2 = vpop.xlane.xlu0 %262 }
 0x2e6   :  { %v265_v4 = vmul.f32 %v260_v1, %v260_v1  ;;  %v264_v3 = vmul.f32 0.0078125, %v263_v2  ;;  %v270_v8 = vsub.f32 %v254_v61, %v260_v1 }
 0x2e8   :  { %v266_v5 = vsub.f32 %v264_v3, %v265_v4 }
 0x2ea   :  { %v267_v6 = vmax.f32 %v266_v5, 0.0 }
 0x2ec   :  { %v268_v7 = vadd.f32 1e-06, %v267_v6 }
 0x2ee   :  { %400 = vrsqrt.f32 %v268_v7 }
 0x2f8   :  { %v401_v9 = vpop.eup %400 }
 0x2f9   :  { %v271_v11 = vmul.f32 %v401_v9, %v270_v8 }
 0x2fb   :  { %v279_v13 = vmul.f32 %v317_v10, %v271_v11 }
 0x2fd   :  { %v287_v14 = vadd.f32 %v318_v12, %v279_v13 }
 0x2ff   :  { %288 = vst [vmem:[#allocation2] sm:$0xff] %v287_v14 }
 0x300   :  { %293 = vsyncadd [#allocation3], 96  ;;  %s437_s23 = smov [#allocation2]  }
 0x301   :  { %s294_s24 = sshll.u32 %s437_s23, 4  ;;  %s295_s24 = int_to_ptr.vmem [resolvable:$true] %s294_s24 }
 0x302   :  { %s402_s0 = scalar_lea.vmem %s295_s24, 32  ;;  %s406_s1 = scalar_lea.vmem %s295_s24, 128 }
 0x303   :  { %p403_p0 = scmp.ne.s32.totalorder %s295_s24, %s402_s0  ;;  %p407_p1 = scmp.lt.s32.totalorder %s295_s24, %s295_s24 }
 0x304   :  { %p408_p2 = scmp.lt.s32.totalorder %s406_s1, %s402_s0 }
 0x306   :  { %p409_p3 = por %p408_p2, %p407_p1 }
 0x308   :  { %p410_p4 = pnand %p409_p3, %p403_p0 }
 0x30a   :  { %413 = shalt.err (!%p410_p4)
}
 0x30b   :  { %s414_s26 = scalar_lea.hbm %s550_s6, 32 }
 0x30c   :  { %p415_p5 = scmp.ne.s32.totalorder %s550_s6, %s414_s26  ;;  %p418_p6 = scmp.lt.u32.totalorder %s414_s26, %s550_s6 }
 0x30e   :  { %p420_p7 = pnand %p418_p6, %p415_p5 }
 0x310   :  { %423 = shalt.err (!%p420_p7)
}
 0x311   :  { %s438_s30 = smov 32   ;;  %s439_s7 = smov 2  }
 0x312   :  { %300 = dma.vmem_to_hbm [thread:$0]  %s295_s24, 32, %s550_s6, [#allocation3], %s438_s30, %s438_s30, %s439_s7  }
 0x313   :  { %424 = dma.done.wait [#allocation3], 128  }
 0x314   :  { %425 = vsyncadd [#allocation3], 4294967168 }
 0x315   :  { %304 = vsyncpa [#allocation3], 1 }

</bundles_post_ra>
